<compile_context>
chip_gen: v5e
topology: v5e:2x2
jax: 0.10.0
libtpu: 0.0.40
codegen_flags: <defaults>
</compile_context>

<pallas_src>
import functools

import jax
import jax.numpy as jnp
from jax.experimental import pallas as pl
from jax.experimental.pallas import tpu as pltpu

_GELU_C = 0.7978845608028654  # sqrt(2/pi)


def _round_up(x, m):
    return ((x + m - 1) // m) * m


def _cdiv(a, b):
    return -(-a // b)


def _vmem_cap_bytes():
    """~80% of physical VMEM; conservative 64 MiB fallback if query fails."""
    phys = 64 * 1024 * 1024
    try:
        info = pltpu.get_tpu_info()
        phys = int(getattr(info, "vmem_capacity_bytes", phys))
    except Exception:
        pass
    return int(phys * 0.8)


def _choose_th(Dp, Hp, weight_itemsize, cap, th_max):
    """Hidden-panel width: full Hp (resident weights) if they fit in ~45% of
    the VMEM budget, otherwise a 256-multiple panel that divides Hp."""
    resident_bytes = 2 * Dp * Hp * weight_itemsize  # W_fc + W_proj, 1 buffer
    if resident_bytes <= int(0.45 * cap):
        return Hp
    for t in (1024, 512, 256):
        if t <= min(th_max, Hp) and Hp % t == 0:
            return t
    return Hp  # fallback (only reachable with unusual padding choices)


def _vmem_estimate(tm, th, Dp, wb, ob, resident):
    wbuf = 1 if resident else 2
    return (2 * tm * Dp * wb                      # x tile (double-buffered)
            + wbuf * (Dp * th + th * Dp) * wb     # W_fc / W_proj panels
            + wbuf * 8 * th * 4 + 8 * Dp * 4      # biases (sublane-padded f32)
            + 2 * tm * Dp * ob                    # output tile
            + tm * Dp * 4                         # f32 accumulator scratch
            + tm * th * 4)                        # live (tm, th) intermediate


def _weight_spec(shape, index_map, single):
    """BlockSpec that single-buffers constant-index blocks when supported."""
    if single:
        try:
            return pl.BlockSpec(shape, index_map, pipeline_mode=pl.Buffered(1))
        except Exception:
            pass
    return pl.BlockSpec(shape, index_map)


def _expert_kernel(x_ref, wfc_ref, bfc_ref, wproj_ref, bproj_ref, o_ref,
                   acc_ref, *, gelu_dtype):
    k = pl.program_id(1)

    @pl.when(k == 0)
    def _init():
        acc_ref[...] = jnp.zeros_like(acc_ref)

    # c_fc panel: (tm, Dp) @ (Dp, th) -> (tm, th), f32 accumulation on MXU.
    h = jnp.dot(x_ref[...], wfc_ref[...], preferred_element_type=jnp.float32)
    h = (h + bfc_ref[...]).astype(gelu_dtype)      # (1, th) bias broadcasts
    # GELU(approximate='tanh') via the exact identity
    #   0.5*x*(1 + tanh(z)) == x * sigmoid(2z),  z = c*(x + 0.044715*x^3)
    z = (2.0 * _GELU_C) * (h + 0.044715 * (h * h * h))
    h = h * (1.0 / (1.0 + jnp.exp(-z)))
    # c_proj panel: (tm, th) @ (th, Dp) accumulated into the f32 scratch.
    acc_ref[...] += jnp.dot(h.astype(wproj_ref.dtype), wproj_ref[...],
                            preferred_element_type=jnp.float32)

    @pl.when(k == pl.num_programs(1) - 1)
    def _finalize():
        o_ref[...] = (acc_ref[...] + bproj_ref[...]).astype(o_ref.dtype)


def prepare_expert_params(w_fc, b_fc, w_proj, b_proj, *, pad_multiple=256,
                          compute_dtype=jnp.bfloat16):
    """Pad/cast the expert weights once (hoisted out of the per-call path).

    Zero padding is exact: padded D columns of x hit zero rows of W_fc; padded
    H columns have b_fc = 0 so GELU(0) = 0 and they hit zero rows of W_proj;
    padded output columns are 0 + 0 bias and are sliced away by the caller.
    """
    D, H = w_fc.shape
    assert w_proj.shape == (H, D) and b_fc.shape == (H,) and b_proj.shape == (D,)
    Dp = _round_up(D, pad_multiple)
    Hp = _round_up(H, pad_multiple)
    wfc = jnp.pad(w_fc.astype(compute_dtype), ((0, Dp - D), (0, Hp - H)))
    wproj = jnp.pad(w_proj.astype(compute_dtype), ((0, Hp - H), (0, Dp - D)))
    bfc = jnp.pad(b_fc.astype(jnp.float32), (0, Hp - H)).reshape(1, Hp)
    bproj = jnp.pad(b_proj.astype(jnp.float32), (0, Dp - D)).reshape(1, Dp)
    return {"wfc": wfc, "bfc": bfc, "wproj": wproj, "bproj": bproj}


def expert_layer_prepared(x, params, *, tm=512, th_max=1024,
                          gelu_dtype=jnp.bfloat16, out_dtype=None):
    """Fused GPT-2 MLP expert with pre-padded weights (see prepare_expert_params).

    x: (B, S, D).  gelu_dtype: bf16 on v6e/v7x (bf16 VPU/EUP), f32 on v5e.
    out_dtype: defaults to x.dtype (pass bf16 if the surrounding model is bf16).
    """
    wfc, bfc = params["wfc"], params["bfc"]
    wproj, bproj = params["wproj"], params["bproj"]
    B, S, D = x.shape
    Dp, Hp = wfc.shape
    assert D <= Dp and wproj.shape == (Hp, Dp)
    compute_dtype = wfc.dtype
    out_dtype = x.dtype if out_dtype is None else out_dtype
    M = B * S

    cap = _vmem_cap_bytes()
    wb = jnp.dtype(compute_dtype).itemsize
    ob = jnp.dtype(out_dtype).itemsize

    # Hidden panel width (resident vs. H-streaming) and row tile.
    th = _choose_th(Dp, Hp, wb, cap, th_max)
    n_h_tiles = Hp // th
    resident = n_h_tiles == 1

    tm_eff = max(8, min(tm, _round_up(M, 8)))
    if M > 8 and _cdiv(M, tm_eff) < 2:     # keep both v7x TCs busy when possible
        tm_eff = _round_up(_cdiv(M, 2), 8)
    while (_vmem_estimate(tm_eff, th, Dp, wb, ob, resident) > int(0.9 * cap)
           and tm_eff > 64):
        tm_eff = max(64, _round_up(tm_eff // 2, 8))

    n_row_tiles = _cdiv(M, tm_eff)
    Mp = n_row_tiles * tm_eff

    x2 = x.reshape(M, D)
    if x2.dtype != compute_dtype:
        x2 = x2.astype(compute_dtype)
    if Mp != M or Dp != D:
        x2 = jnp.pad(x2, ((0, Mp - M), (0, Dp - D)))

    est = _vmem_estimate(tm_eff, th, Dp, wb, ob, resident)
    vmem_limit = int(min(cap, max(est * 1.4 + (2 << 20), 32 << 20)))

    cost = pl.CostEstimate(
        flops=int(4 * Mp * Dp * Hp),                 # two matmuls, 2*M*D*H each
        transcendentals=int(Mp * Hp),                # one exp per hidden element
        bytes_accessed=int(Mp * Dp * wb
                           + (1 if resident else n_row_tiles) * 2 * Dp * Hp * wb
                           + Hp * 4 + Dp * 4
                           + Mp * Dp * ob),
    )

    kernel = functools.partial(_expert_kernel, gelu_dtype=gelu_dtype)

    out = pl.pallas_call(
        kernel,
        out_shape=jax.ShapeDtypeStruct((Mp, Dp), out_dtype),
        grid_spec=pltpu.PrefetchScalarGridSpec(
            num_scalar_prefetch=0,
            grid=(n_row_tiles, n_h_tiles),           # reduction (H) axis last
            in_specs=[
                pl.BlockSpec((tm_eff, Dp), lambda i, k: (i, 0)),       # x rows
                _weight_spec((Dp, th), lambda i, k: (0, k), resident),  # W_fc
                _weight_spec((1, th), lambda i, k: (0, k), resident),   # b_fc
                _weight_spec((th, Dp), lambda i, k: (k, 0), resident),  # W_proj
                _weight_spec((1, Dp), lambda i, k: (0, 0), True),       # b_proj
            ],
            out_specs=pl.BlockSpec((tm_eff, Dp), lambda i, k: (i, 0)),
            scratch_shapes=[pltpu.VMEM((tm_eff, Dp), jnp.float32)],
        ),
        compiler_params=pltpu.CompilerParams(
            dimension_semantics=("parallel", "arbitrary"),
            vmem_limit_bytes=vmem_limit,
        ),
        cost_estimate=cost,
    )(x2, wfc, bfc, wproj, bproj)

    return out[:M, :D].reshape(B, S, D).astype(out_dtype)


def expert_layer(x, w_fc, b_fc, w_proj, b_proj, *, tm=512, th_max=1024,
                 pad_multiple=256, compute_dtype=jnp.bfloat16,
                 gelu_dtype=jnp.bfloat16, out_dtype=None):
    """Convenience wrapper: prepares (pads/casts) the weights then runs the kernel.
    For repeated calls, call prepare_expert_params() once and use
    expert_layer_prepared() to keep weight prep out of the hot path."""
    params = prepare_expert_params(w_fc, b_fc, w_proj, b_proj,
                                   pad_multiple=pad_multiple,
                                   compute_dtype=compute_dtype)
    return expert_layer_prepared(x, params, tm=tm, th_max=th_max,
                                 gelu_dtype=gelu_dtype, out_dtype=out_dtype)


def expert_layer_ref(x, w_fc, b_fc, w_proj, b_proj):
    h = jnp.einsum("bsd,dh->bsh", x, w_fc) + b_fc
    h = 0.5 * h * (1.0 + jnp.tanh(_GELU_C * (h + 0.044715 * h ** 3)))
    return jnp.einsum("bsh,hd->bsd", h, w_proj) + b_proj


if __name__ == "__main__":
    B, S = 2, 8          # batch, seq
    D, H = 32, 128       # input_dim, hidden_dim

    key = jax.random.PRNGKey(0)
    kx, kwf, kbf, kwp, kbp = jax.random.split(key, 5)

    x = jax.random.normal(kx, (B, S, D), dtype=jnp.float32)
    # GPT-2 Conv1D init: weight ~ N(0, 0.02); small random bias to exercise
    # the add path.
    w_fc = 0.02 * jax.random.normal(kwf, (D, H), dtype=jnp.float32)
    b_fc = 0.01 * jax.random.normal(kbf, (H,), dtype=jnp.float32)
    w_proj = 0.02 * jax.random.normal(kwp, (H, D), dtype=jnp.float32)
    b_proj = 0.01 * jax.random.normal(kbp, (D,), dtype=jnp.float32)

    # Hoisted weight prep + kernel call (the recommended hot-path usage).
    params = prepare_expert_params(w_fc, b_fc, w_proj, b_proj)
    out = expert_layer_prepared(x, params)
    out = jax.block_until_ready(out)

    ref = expert_layer_ref(x, w_fc, b_fc, w_proj, b_proj)
    assert out.shape == (B, S, D)
    # bf16 matmul inputs / bf16 GELU with f32 accumulation vs a pure-f32 ref.
    assert jnp.allclose(out, ref, atol=1e-2, rtol=1e-2), "mismatch vs reference"

    print("KERNEL_OK")
</pallas_src>

<mosaic_0001>
module attributes {stable_mosaic.version = 11 : i64} {
  func.func @_expert_kernel(%arg0: i32, %arg1: i32, %arg2: memref<8x256xbf16, #tpu.memory_space<vmem>>, %arg3: memref<256x256xbf16, #tpu.memory_space<vmem>>, %arg4: memref<1x256xf32, #tpu.memory_space<vmem>>, %arg5: memref<256x256xbf16, #tpu.memory_space<vmem>>, %arg6: memref<1x256xf32, #tpu.memory_space<vmem>>, %arg7: memref<8x256xf32, #tpu.memory_space<vmem>>, %arg8: memref<8x256xf32, #tpu.memory_space<vmem>>) attributes {dimension_semantics = [#tpu.dimension_semantics<parallel>, #tpu.dimension_semantics<arbitrary>], iteration_bounds = array<i64: 2, 1>, scalar_prefetch = 0 : i64, scratch_operands = 1 : i64, tpu.core_type = #tpu.core_type<tc>, window_params = [{transform_indices = @transform_0, window_bounds = array<i64: 8, 256>}, {pipeline_mode = #tpu.pipeline_mode<synchronous>, transform_indices = @transform_1, window_bounds = array<i64: 256, 256>}, {pipeline_mode = #tpu.pipeline_mode<synchronous>, transform_indices = @transform_2, window_bounds = array<i64: 1, 256>}, {pipeline_mode = #tpu.pipeline_mode<synchronous>, transform_indices = @transform_3, window_bounds = array<i64: 256, 256>}, {pipeline_mode = #tpu.pipeline_mode<synchronous>, transform_indices = @transform_4, window_bounds = array<i64: 1, 256>}, {transform_indices = @transform_5, window_bounds = array<i64: 8, 256>}]} {
    %c0_i32 = arith.constant 0 : i32
    %0 = arith.cmpi eq, %arg1, %c0_i32 : i32
    %1 = arith.extui %0 : i1 to i32
    %c0_i32_0 = arith.constant 0 : i32
    %2 = arith.cmpi ne, %1, %c0_i32_0 : i32
    scf.if %2 {
      %cst_20 = arith.constant 0.000000e+00 : f32
      %33 = vector.broadcast %cst_20 : f32 to vector<8x256xf32>
      %c0_21 = arith.constant 0 : index
      %c0_22 = arith.constant 0 : index
      %34 = vector.load %arg8[%c0_21, %c0_22] : memref<8x256xf32, #tpu.memory_space<vmem>>, vector<8x256xf32>
      tpu.vector_store %arg8[%c0_21, %c0_22], %33 {strides = array<i32>} : memref<8x256xf32, #tpu.memory_space<vmem>>, vector<8x256xf32>,
    } else {
    }
    %c0 = arith.constant 0 : index
    %c0_1 = arith.constant 0 : index
    %3 = vector.load %arg2[%c0, %c0_1] : memref<8x256xbf16, #tpu.memory_space<vmem>>, vector<8x256xbf16>
    %c0_2 = arith.constant 0 : index
    %c0_3 = arith.constant 0 : index
    %4 = vector.load %arg3[%c0_2, %c0_3] : memref<256x256xbf16, #tpu.memory_space<vmem>>, vector<256x256xbf16>
    %cst = arith.constant dense<0.000000e+00> : vector<8x256xf32>
    %5 = tpu.matmul %3, %4, %cst {dimension_numbers = #tpu.dot_dimension_numbers<[1], [0], [0], [1], [0, 0, 1, 1], [], []>} : vector<8x256xbf16>, vector<256x256xbf16>, vector<8x256xf32> -> vector<8x256xf32>
    %c0_4 = arith.constant 0 : index
    %c0_5 = arith.constant 0 : index
    %6 = vector.load %arg4[%c0_4, %c0_5] : memref<1x256xf32, #tpu.memory_space<vmem>>, vector<1x256xf32>
    %7 = vector.broadcast %6 : vector<1x256xf32> to vector<8x256xf32>
    %8 = arith.addf %5, %7 : vector<8x256xf32>
    %9 = arith.truncf %8 : vector<8x256xf32> to vector<8x256xbf16>
    %10 = arith.mulf %9, %9 : vector<8x256xbf16>
    %11 = arith.mulf %10, %9 : vector<8x256xbf16>
    %cst_6 = arith.constant 4.467770e-02 : bf16
    %12 = vector.broadcast %cst_6 : bf16 to vector<8x256xbf16>
    %13 = arith.mulf %12, %11 : vector<8x256xbf16>
    %14 = arith.addf %9, %13 : vector<8x256xbf16>
    %cst_7 = arith.constant 1.593750e+00 : bf16
    %15 = vector.broadcast %cst_7 : bf16 to vector<8x256xbf16>
    %16 = arith.mulf %15, %14 : vector<8x256xbf16>
    %cst_8 = arith.constant 0.000000e+00 : bf16
    %17 = vector.broadcast %cst_8 : bf16 to vector<8x256xbf16>
    %18 = arith.subf %17, %16 : vector<8x256xbf16>
    %19 = math.exp %18 : vector<8x256xbf16>
    %cst_9 = arith.constant 1.000000e+00 : bf16
    %20 = vector.broadcast %cst_9 : bf16 to vector<8x256xbf16>
    %21 = arith.addf %20, %19 : vector<8x256xbf16>
    %cst_10 = arith.constant 1.000000e+00 : bf16
    %22 = vector.broadcast %cst_10 : bf16 to vector<8x256xbf16>
    %23 = arith.divf %22, %21 : vector<8x256xbf16>
    %24 = arith.mulf %9, %23 : vector<8x256xbf16>
    %c0_11 = arith.constant 0 : index
    %c0_12 = arith.constant 0 : index
    %25 = vector.load %arg8[%c0_11, %c0_12] : memref<8x256xf32, #tpu.memory_space<vmem>>, vector<8x256xf32>
    %c0_13 = arith.constant 0 : index
    %c0_14 = arith.constant 0 : index
    %26 = vector.load %arg5[%c0_13, %c0_14] : memref<256x256xbf16, #tpu.memory_space<vmem>>, vector<256x256xbf16>
    %cst_15 = arith.constant dense<0.000000e+00> : vector<8x256xf32>
    %27 = tpu.matmul %24, %26, %cst_15 {dimension_numbers = #tpu.dot_dimension_numbers<[1], [0], [0], [1], [0, 0, 1, 1], [], []>} : vector<8x256xbf16>, vector<256x256xbf16>, vector<8x256xf32> -> vector<8x256xf32>
    %28 = arith.addf %25, %27 : vector<8x256xf32>
    %c0_16 = arith.constant 0 : index
    %c0_17 = arith.constant 0 : index
    %29 = vector.load %arg8[%c0_16, %c0_17] : memref<8x256xf32, #tpu.memory_space<vmem>>, vector<8x256xf32>
    tpu.vector_store %arg8[%c0_16, %c0_17], %28 {strides = array<i32>} : memref<8x256xf32, #tpu.memory_space<vmem>>, vector<8x256xf32>,
    %c0_i32_18 = arith.constant 0 : i32
    %30 = arith.cmpi eq, %arg1, %c0_i32_18 : i32
    %31 = arith.extui %30 : i1 to i32
    %c0_i32_19 = arith.constant 0 : i32
    %32 = arith.cmpi ne, %31, %c0_i32_19 : i32
    scf.if %32 {
      %c0_20 = arith.constant 0 : index
      %c0_21 = arith.constant 0 : index
      %33 = vector.load %arg8[%c0_20, %c0_21] : memref<8x256xf32, #tpu.memory_space<vmem>>, vector<8x256xf32>
      %c0_22 = arith.constant 0 : index
      %c0_23 = arith.constant 0 : index
      %34 = vector.load %arg6[%c0_22, %c0_23] : memref<1x256xf32, #tpu.memory_space<vmem>>, vector<1x256xf32>
      %35 = vector.broadcast %34 : vector<1x256xf32> to vector<8x256xf32>
      %36 = arith.addf %33, %35 : vector<8x256xf32>
      %c0_24 = arith.constant 0 : index
      %c0_25 = arith.constant 0 : index
      %37 = vector.load %arg7[%c0_24, %c0_25] : memref<8x256xf32, #tpu.memory_space<vmem>>, vector<8x256xf32>
      tpu.vector_store %arg7[%c0_24, %c0_25], %36 {strides = array<i32>} : memref<8x256xf32, #tpu.memory_space<vmem>>, vector<8x256xf32>,
    } else {
    }
    return
  }
  func.func @transform_0(%arg0: i32, %arg1: i32) -> (i32, i32) {
    %c0_i32 = arith.constant 0 : i32
    %c0_i32_0 = arith.constant 0 : i32
    return %arg0, %c0_i32 : i32, i32
  }
  func.func @transform_1(%arg0: i32, %arg1: i32) -> (i32, i32) {
    %c0_i32 = arith.constant 0 : i32
    %c0_i32_0 = arith.constant 0 : i32
    return %c0_i32, %arg1 : i32, i32
  }
  func.func @transform_2(%arg0: i32, %arg1: i32) -> (i32, i32) {
    %c0_i32 = arith.constant 0 : i32
    %c0_i32_0 = arith.constant 0 : i32
    return %c0_i32, %arg1 : i32, i32
  }
  func.func @transform_3(%arg0: i32, %arg1: i32) -> (i32, i32) {
    %c0_i32 = arith.constant 0 : i32
    %c0_i32_0 = arith.constant 0 : i32
    return %arg1, %c0_i32 : i32, i32
  }
  func.func @transform_4(%arg0: i32, %arg1: i32) -> (i32, i32) {
    %c0_i32 = arith.constant 0 : i32
    %c0_i32_0 = arith.constant 0 : i32
    %c0_i32_1 = arith.constant 0 : i32
    return %c0_i32, %c0_i32_0 : i32, i32
  }
  func.func @transform_5(%arg0: i32, %arg1: i32) -> (i32, i32) {
    %c0_i32 = arith.constant 0 : i32
    %c0_i32_0 = arith.constant 0 : i32
    return %arg0, %c0_i32 : i32, i32
  }
}

</mosaic_0001>

<bundles_post_ra>
// kernel: tpu_custom_call.1
= control target key start
LH: loop header
LB: loop body
LE: loop exit
PB: predicated region body
PF: predicated region fallthrough
CT: control target
= control target key end

     0   :  { %10 = vsyncpa [#allocation4], 0  ;;  %s1931_s0 = inlined_call_operand.hbm [shape: bf16[16,256], index: 0, kind: input, shape index: {}]   ;;  %s1932_s1 = inlined_call_operand.hbm [shape: bf16[256,256], index: 1, kind: input, shape index: {}]   ;;  %s1933_s2 = inlined_call_operand.hbm [shape: f32[1,256], index: 2, kind: input, shape index: {}]   ;;  %s1934_s3 = inlined_call_operand.hbm [shape: bf16[256,256], index: 3, kind: input, shape index: {}]   ;;  %s1935_s4 = inlined_call_operand.vmem [shape: f32[1,256], index: 4, kind: input, shape index: {}]   ;;  %s1936_s5 = inlined_call_operand.hbm [shape: f32[16,256], index: 5, kind: output, shape index: {}]  }
   0x1   :  { %12 = vsyncpa [#allocation4 + $0x1], 0 }
   0x2   :  { %13 = vsyncpa [#allocation7], 0 }
   0x3   :  { %14 = vsyncpa [#allocation10], 0 }
   0x4   :  { %15 = vsyncpa [#allocation5], 0 }
   0x5   :  { %17 = vsyncpa [#allocation5 + $0x1], 0  ;;  %s1743_s18 = smov 0   ;;  %s1745_s19 = smov 0  }
   0x6   :  { %s1747_s20 = smov 0   ;;  %s1749_s21 = smov 0  }
   0x7   :  { %s1751_s22 = smov 0   ;;  %s1753_s23 = smov 0  }
   0x8 LB: > { %s1048_s24 = sadd.s32 4294967295, %s1705_s23   ;;  %p1050_p0 = scmp.ge.s32.totalorder %s1705_s23, 1  ;;  %s1705_s23 = sphi %s1753_s23, %s23_s23   ;;  %s1701_s22 = sphi %s1751_s22, %s1948_s22   ;;  %s1697_s21 = sphi %s1749_s21, %s1947_s21   ;;  %s1693_s20 = sphi %s1747_s20, %s1946_s20   ;;  %s1689_s19 = sphi %s1745_s19, %s1945_s19   ;;  %s1685_s18 = sphi %s1743_s18, %s1944_s18  }
   0x9   : > { %p1777_p1 = scmp.eq.s32.totalorder %s1048_s24, 0  ;;  %p191_p2 = scmp.lt.s32.totalorder %s1705_s23, 3 }
   0xa   : > { %s205_s28 = sshll.u32 %s1932_s1, 4  ;;  %s1707_s30 = smov [#allocation6]   ;;  %s206_s28 = int_to_ptr.hbm [resolvable:$true] %s205_s28 }
   0xb   : > { %p1785_p3 = pnand %p1050_p0, %p191_p2  ;;  %s207_s6 = sshll.u32 %s1707_s30, 4  ;;  %s208_s6 = int_to_ptr.vmem [resolvable:$true] %s207_s6 }
   0xc   : > { %p1054_p6 = scmp.ge.s32.totalorder %s1705_s23, 2  ;;  %s222_s10 = sshll.u32 %s1933_s2, 4  ;;  %s223_s10 = int_to_ptr.hbm [resolvable:$true] %s222_s10 }
   0xd   : > { %p1407_p4 = pneg %p1785_p3  ;;  %s1708_s11 = smov 128  }
   0xe   : > { %s1709_s12 = smov 8   ;;  %s1710_s13 = smov [#allocation8]  }
   0xf   : > { %p1793_p5 = pnand %p1407_p4, %p1777_p1  ;;  %s224_s14 = sshll.u32 %s1710_s13, 4  ;;  %s225_s14 = int_to_ptr.vmem [resolvable:$true] %s224_s14 }
  0x10   : > { %s237_s17 = sshll.u32 %s1934_s3, 4  ;;  %s1711_s26 = smov [#allocation9]   ;;  %s238_s17 = int_to_ptr.hbm [resolvable:$true] %s237_s17 }
  0x11   : > { %1410 = dma.hbm_to_vmem [thread:$0]  (!%p1793_p5), %s206_s28, 4096, %s208_s6, [#allocation7], %s1708_s11, %s1708_s11, %s1709_s12  }
  0x12   : > { %1413 = dma.hbm_to_vmem [thread:$0]  (!%p1793_p5), %s223_s10, 32, %s225_s14, [#allocation7]  }
  0x13   : > { %s239_s27 = sshll.u32 %s1711_s26, 4  ;;  %s1049_s28 = sadd.s32 4294967294, %s1705_s23   ;;  %s240_s27 = int_to_ptr.vmem [resolvable:$true] %s239_s27 }
  0x14   : > { %1416 = dma.hbm_to_vmem [thread:$0]  (!%p1793_p5), %s238_s17, 4096, %s240_s27, [#allocation10], %s1708_s11, %s1708_s11, %s1709_s12  }
  0x15   : > { %s35_s30 = sadd.s32 1, %s1701_s22  ;;  %s42_s6 = sadd.s32 1, %s1693_s20 }
  0x16   : > { %p37_p7 = scmp.ge.s32.totalorder %s35_s30, 2  ;;  %p49_p8 = scmp.ne.s32.totalorder %s1693_s20, %s1689_s19 }
  0x17   : > { %p50_p9 = scmp.eq.s32.totalorder %s1705_s23, 0  ;;  %p55_p10 = scmp.ne.s32.totalorder %s1689_s19, %s1685_s18 }
  0x18   : > { %s1950_s30 = smov (%p37_p7, %s35_s30), 0  ;;  %p178_p13 = scmp.eq.s32.totalorder %s1048_s24, 1 }
  0x19   : > { %p1820_p11 = por %p50_p9, %p49_p8  ;;  %p1826_p12 = por %p1777_p1, %p55_p10 }
  0x1a   : > { %s39_s9 = ssub.s32 %s1701_s22, %s1950_s30  ;;  %p184_p2 = scmp.eq.s32.totalorder %s1049_s28, 1 }
  0x1b   : > { %p40_p0 = scmp.eq.s32.totalorder %s39_s9, 0  ;;  %p1834_p4 = por %p178_p13, %p49_p8 }
  0x1c   : > { %p1428_p5 = scmp.lt.s32.totalorder %s1705_s23, 2  ;;  %p1842_p7 = por %p184_p2, %p55_p10 }
  0x1d   : > { %s1840_s11 = scalar_select %p40_p0, %s1693_s20, %s42_s6  }
  0x1e   : > { %s256_s13 = sand.u32 1, %s1693_s20   ;;  %s1325_s15 = sshll.u32 %s1701_s22, 3 }
  0x1f   : > { %s1055_s14 = sshll.u32 %s256_s13, 3  ;;  %s265_s24 = scalar_lea.hbm %s1931_s0, %s1325_s15 }
  0x20   : > { %s260_s26 = scalar_lea.vmem [#allocation3], %s1055_s14  ;;  %s267_s28 = sshll.u32 %s265_s24, 4  ;;  %s268_s28 = int_to_ptr.hbm [resolvable:$true] %s267_s28 }
  0x21   : > { %s269_s27 = sshll.u32 %s260_s26, 4  ;;  %p1418_p8 = pnand %p1428_p5, %p1820_p11  ;;  %s270_s27 = int_to_ptr.vmem [resolvable:$true] %s269_s27 }
  0x22   : > { %s257_s6 = scalar_lea.sflag [#allocation4], %s256_s13  ;;  %278 = sbr.rel (%p1785_p3) target bundleno = 435 (0x1b3), region = 40 }
  0x23   : > { %1420 = dma.hbm_to_vmem [thread:$0]  (!%p1418_p8), %s268_s28, 128, %s270_s27, %s257_s6  }
  0x24   : > { %s1856_s9 = sand.u32 (!%p1785_p3), 1, %s1689_s19  }
  0x25   : > { %s1059_s16 = sshll.u32 (!%p1785_p3), %s1856_s9, 3  ;;  %s281_s15 = scalar_lea.sflag (!%p1785_p3), [#allocation4], %s1856_s9 }
  0x26   : > { %s1860_s14 = scalar_lea.vmem (!%p1785_p3), [#allocation3], %s1059_s16 }
  0x27   : > { %1668 = dma.done.wait (%p1826_p12), %s281_s15, 128  }
  0x28   : > { %1670 = vsyncadd (%p1826_p12), %s281_s15, 4294967168 }
  0x29   : > { %1672 = dma.done.wait (%p1777_p1), [#allocation7], 4128  }
  0x2a   : > { %1674 = vsyncadd (%p1777_p1), [#allocation7], 4294963168 }
  0x2b   : > { %1676 = dma.done.wait (%p1777_p1), [#allocation10], 4096  }
  0x2c   : > { %1678 = vsyncadd (%p1777_p1), [#allocation10], 4294963200  ;;  %v1122_v0 = vld [vmem:[#allocation6 + $0x70] sm:$0xf]  ;;  %v1341_v1 = vld [vmem:[#allocation6 + $0x74] sm:$0xf0] }
  0x2d   : > { %v1186_v2 = vld [vmem:[#allocation6 + $0xf0] sm:$0xf]  ;;  %v1123_v3 = vor.u32 %v1341_v1, %v1122_v0  ;;  %v1357_v4 = vld [vmem:[#allocation6 + $0xf4] sm:$0xf0]  ;;  %v1340_v5 = vld [vmem:[#allocation6 + $0x74] sm:$0xf] }
  0x2e   : > { %v1124_v6 = vld [vmem:[#allocation6 + $0x78] sm:$0xf0]  ;;  %v1187_v7 = vor.u32 %v1357_v4, %v1186_v2  ;;  %v1356_v9 = vld [vmem:[#allocation6 + $0xf4] sm:$0xf]  ;;  %v1114_v11 = vld [vmem:[#allocation6 + $0x60] sm:$0xf] }
  0x2f   : > { %v1127_v8 = vor.u32 %v1340_v5, %v1124_v6  ;;  %v1188_v10 = vld [vmem:[#allocation6 + $0xf8] sm:$0xf0]  ;;  %543 = vmatpush.bf16.msra.mxu0 %v1123_v3  ;;  %v1339_v13 = vld [vmem:[#allocation6 + $0x64] sm:$0xf0]  ;;  %v1178_v14 = vld [vmem:[#allocation6 + $0xe0] sm:$0xf] }
  0x30   : > { %v1191_v12 = vor.u32 %v1356_v9, %v1188_v10  ;;  %v1355_v15 = vld [vmem:[#allocation6 + $0xe4] sm:$0xf0]  ;;  %556 = vmatpush.bf16.msra.mxu1 %v1187_v7  ;;  %v1115_v16 = vor.u32 %v1339_v13, %v1114_v11  ;;  %v1338_v18 = vld [vmem:[#allocation6 + $0x64] sm:$0xf]  ;;  %v1116_v19 = vld [vmem:[#allocation6 + $0x68] sm:$0xf0] }
  0x31   : > { %569 = vmatpush.bf16.msra.mxu2 %v1127_v8  ;;  %v1179_v17 = vor.u32 %v1355_v15, %v1178_v14  ;;  %v1354_v20 = vld [vmem:[#allocation6 + $0xe4] sm:$0xf]  ;;  %v1119_v21 = vor.u32 %v1338_v18, %v1116_v19  ;;  %v1180_v22 = vld [vmem:[#allocation6 + $0xe8] sm:$0xf0]  ;;  %v1106_v23 = vld [vmem:[#allocation6 + $0x50] sm:$0xf] }
  0x32   : > { %582 = vmatpush.bf16.msra.mxu3 %v1191_v12  ;;  %v1337_v24 = vld [vmem:[#allocation6 + $0x54] sm:$0xf0]  ;;  %v1183_v25 = vor.u32 %v1354_v20, %v1180_v22  ;;  %v1170_v26 = vld [vmem:[#allocation6 + $0xd0] sm:$0xf]  ;;  %v1336_v28 = vld [vmem:[#allocation6 + $0x54] sm:$0xf] }
  0x33   : > { %v1353_v27 = vld [vmem:[#allocation6 + $0xd4] sm:$0xf0]  ;;  %544 = vmatpush.bf16.msra.mxu0 %v1115_v16  ;;  %v1107_v29 = vor.u32 %v1337_v24, %v1106_v23  ;;  %v1108_v30 = vld [vmem:[#allocation6 + $0x58] sm:$0xf0]  ;;  %v1352_v31 = vld [vmem:[#allocation6 + $0xd4] sm:$0xf] }
  0x34   : > { %v1172_v32 = vld [vmem:[#allocation6 + $0xd8] sm:$0xf0]  ;;  %557 = vmatpush.bf16.msra.mxu1 %v1179_v17  ;;  %v1171_v33 = vor.u32 %v1353_v27, %v1170_v26  ;;  %v1111_v34 = vor.u32 %v1336_v28, %v1108_v30  ;;  %v1098_v35 = vld [vmem:[#allocation6 + $0x40] sm:$0xf]  ;;  %v1335_v36 = vld [vmem:[#allocation6 + $0x44] sm:$0xf0] }
  0x35   : > { %570 = vmatpush.bf16.msra.mxu2 %v1119_v21  ;;  %v1162_v37 = vld [vmem:[#allocation6 + $0xc0] sm:$0xf]  ;;  %v1175_v38 = vor.u32 %v1352_v31, %v1172_v32  ;;  %v1351_v39 = vld [vmem:[#allocation6 + $0xc4] sm:$0xf0]  ;;  %v1334_v40 = vld [vmem:[#allocation6 + $0x44] sm:$0xf]  ;;  %v1099_v44 = vor.u32 %v1335_v36, %v1098_v35 }
  0x36   : > { %583 = vmatpush.bf16.msra.mxu3 %v1183_v25  ;;  %v1100_v41 = vld [vmem:[#allocation6 + $0x48] sm:$0xf0]  ;;  %v1350_v42 = vld [vmem:[#allocation6 + $0xc4] sm:$0xf]  ;;  %v1163_v45 = vor.u32 %v1351_v39, %v1162_v37  ;;  %v1090_v47 = vld [vmem:[#allocation6 + $0x30] sm:$0xf] }
  0x37   : > { %v1164_v43 = vld [vmem:[#allocation6 + $0xc8] sm:$0xf0]  ;;  %545 = vmatpush.bf16.msra.mxu0 %v1107_v29  ;;  %v1103_v46 = vor.u32 %v1334_v40, %v1100_v41  ;;  %v1333_v48 = vld [vmem:[#allocation6 + $0x34] sm:$0xf0]  ;;  %v1154_v49 = vld [vmem:[#allocation6 + $0xb0] sm:$0xf] }
  0x38   : > { %558 = vmatpush.bf16.msra.mxu1 %v1171_v33  ;;  %v1167_v50 = vor.u32 %v1350_v42, %v1164_v43  ;;  %v1349_v51 = vld [vmem:[#allocation6 + $0xb4] sm:$0xf0]  ;;  %v1332_v52 = vld [vmem:[#allocation6 + $0x34] sm:$0xf]  ;;  %v1092_v53 = vld [vmem:[#allocation6 + $0x38] sm:$0xf0]  ;;  %v1091_v56 = vor.u32 %v1333_v48, %v1090_v47 }
  0x39   : > { %571 = vmatpush.bf16.msra.mxu2 %v1111_v34  ;;  %v1348_v54 = vld [vmem:[#allocation6 + $0xb4] sm:$0xf]  ;;  %v1156_v55 = vld [vmem:[#allocation6 + $0xb8] sm:$0xf0]  ;;  %v1155_v57 = vor.u32 %v1349_v51, %v1154_v49  ;;  %v1095_v58 = vor.u32 %v1332_v52, %v1092_v53  ;;  %v1082_v59 = vld [vmem:[#allocation6 + $0x20] sm:$0xf] }
  0x3a   : > { %584 = vmatpush.bf16.msra.mxu3 %v1175_v38  ;;  %v1331_v60 = vld [vmem:[#allocation6 + $0x24] sm:$0xf0]  ;;  %v1146_v61 = vld [vmem:[#allocation6 + $0xa0] sm:$0xf]  ;;  %v1159_v62 = vor.u32 %v1348_v54, %v1156_v55  ;;  %v1330_v0 = vld [vmem:[#allocation6 + $0x24] sm:$0xf] }
  0x3b   : > { %546 = vmatpush.bf16.msra.mxu0 %v1099_v44  ;;  %v1347_v63 = vld [vmem:[#allocation6 + $0xa4] sm:$0xf0]  ;;  %v1084_v1 = vld [vmem:[#allocation6 + $0x28] sm:$0xf0]  ;;  %v1346_v2 = vld [vmem:[#allocation6 + $0xa4] sm:$0xf]  ;;  %v1083_v4 = vor.u32 %v1331_v60, %v1082_v59 }
  0x3c   : > { %559 = vmatpush.bf16.msra.mxu1 %v1163_v45  ;;  %v1148_v3 = vld [vmem:[#allocation6 + $0xa8] sm:$0xf0]  ;;  %v1147_v5 = vor.u32 %v1347_v63, %v1146_v61  ;;  %v1087_v6 = vor.u32 %v1330_v0, %v1084_v1  ;;  %v1074_v7 = vld [vmem:[#allocation6 + $0x10] sm:$0xf]  ;;  %v1329_v8 = vld [vmem:[#allocation6 + $0x14] sm:$0xf0] }
  0x3d   : > { %572 = vmatpush.bf16.msra.mxu2 %v1103_v46  ;;  %v1138_v9 = vld [vmem:[#allocation6 + $0x90] sm:$0xf]  ;;  %v1151_v10 = vor.u32 %v1346_v2, %v1148_v3  ;;  %v1345_v11 = vld [vmem:[#allocation6 + $0x94] sm:$0xf0]  ;;  %v1328_v12 = vld [vmem:[#allocation6 + $0x14] sm:$0xf]  ;;  %v1075_v16 = vor.u32 %v1329_v8, %v1074_v7 }
  0x3e   : > { %585 = vmatpush.bf16.msra.mxu3 %v1167_v50  ;;  %v1076_v13 = vld [vmem:[#allocation6 + $0x18] sm:$0xf0]  ;;  %v1344_v14 = vld [vmem:[#allocation6 + $0x94] sm:$0xf]  ;;  %v1139_v18 = vor.u32 %v1345_v11, %v1138_v9  ;;  %v1066_v20 = vld [vmem:[#allocation6] sm:$0xf] }
  0x3f   : > { %547 = vmatpush.bf16.msra.mxu0 %v1091_v56  ;;  %v1140_v15 = vld [vmem:[#allocation6 + $0x98] sm:$0xf0]  ;;  %v1079_v19 = vor.u32 %v1328_v12, %v1076_v13  ;;  %v1327_v21 = vld [vmem:[#allocation6 + $0x4] sm:$0xf0]  ;;  %v1130_v22 = vld [vmem:[#allocation6 + $0x80] sm:$0xf] }
  0x40   : > { %560 = vmatpush.bf16.msra.mxu1 %v1155_v57  ;;  %v337_v17 = vld [vmem:[%s1860_s14] sm:$0xff]  ;;  %v1143_v23 = vor.u32 %v1344_v14, %v1140_v15  ;;  %v1343_v24 = vld [vmem:[#allocation6 + $0x84] sm:$0xf0]  ;;  %v1326_v25 = vld [vmem:[#allocation6 + $0x4] sm:$0xf]  ;;  %v1067_v30 = vor.u32 %v1327_v21, %v1066_v20  ;;  %s1063_s8 = sshll.u32 %s1856_s9, 4 }
  0x41   : > { %573 = vmatpush.bf16.msra.mxu2 %v1095_v58  ;;  %v1068_v26 = vld [vmem:[#allocation6 + $0x8] sm:$0xf0]  ;;  %v1342_v27 = vld [vmem:[#allocation6 + $0x84] sm:$0xf]  ;;  %v377_v29 = vunpack.c.l.b16 %v337_v17  ;;  %v378_v31 = vunpack.c.h.b16 %v337_v17  ;;  %v1131_v32 = vor.u32 %v1343_v24, %v1130_v22  ;;  %v370_v37 = vld [vmem:[#allocation8] sm:$0x3] }
  0x42   : > { %586 = vmatpush.bf16.msra.mxu3 %v1159_v62  ;;  %v1132_v28 = vld [vmem:[#allocation6 + $0x88] sm:$0xf0]  ;;  %v1071_v33 = vor.u32 %v1326_v25, %v1068_v26  ;;  %v372_v38 = vperm.slane %v370_v37, 0  ;;  %v373_v42 = vperm.slane %v370_v37, 1  ;;  %v1250_v62 = vld [vmem:[#allocation9 + $0x70] sm:$0xf] }
  0x43   : > { %548 = vmatpush.bf16.msra.mxu0 %v1083_v4  ;;  %v1135_v34 = vor.u32 %v1342_v27, %v1132_v28  ;;  %v379_v35 = vpack.c.b16 %v377_v29, %v377_v29  ;;  %v380_v36 = vpack.c.b16 %v378_v31, %v378_v31  ;;  %v1373_v63 = vld [vmem:[#allocation9 + $0x74] sm:$0xf0]  ;;  %v1314_v0 = vld [vmem:[#allocation9 + $0xf0] sm:$0xf]  ;;  %v1372_v4 = vld [vmem:[#allocation9 + $0x74] sm:$0xf] }
  0x44   : > { %561 = vmatpush.bf16.msra.mxu1 %v1147_v5  ;;  %v1251_v2 = vor.u32 %v1373_v63, %v1250_v62  ;;  %v1389_v3 = vld [vmem:[#allocation9 + $0xf4] sm:$0xf0]  ;;  %v1252_v5 = vld [vmem:[#allocation9 + $0x78] sm:$0xf0]  ;;  %v1388_v8 = vld [vmem:[#allocation9 + $0xf4] sm:$0xf] }
  0x45   : > { %574 = vmatpush.bf16.msra.mxu2 %v1087_v6  ;;  %v1315_v6 = vor.u32 %v1389_v3, %v1314_v0  ;;  %v1255_v7 = vor.u32 %v1372_v4, %v1252_v5  ;;  %v1316_v9 = vld [vmem:[#allocation9 + $0xf8] sm:$0xf0]  ;;  %v1371_v14 = vld [vmem:[#allocation9 + $0x64] sm:$0xf0]  ;;  %v1306_v15 = vld [vmem:[#allocation9 + $0xe0] sm:$0xf] }
  0x46   : > { %587 = vmatpush.bf16.msra.mxu3 %v1151_v10  ;;  %v1242_v10 = vld [vmem:[#allocation9 + $0x60] sm:$0xf]  ;;  %v1319_v13 = vor.u32 %v1388_v8, %v1316_v9  ;;  %v1244_v20 = vld [vmem:[#allocation9 + $0x68] sm:$0xf0]  ;;  %v1386_v21 = vld [vmem:[#allocation9 + $0xe4] sm:$0xf] }
  0x47   : > { %549 = vmatpush.bf16.msra.mxu0 %v1075_v16  ;;  %v1387_v16 = vld [vmem:[#allocation9 + $0xe4] sm:$0xf0]  ;;  %v1243_v17 = vor.u32 %v1371_v14, %v1242_v10  ;;  %v1308_v25 = vld [vmem:[#allocation9 + $0xe8] sm:$0xf0]  ;;  %v1234_v26 = vld [vmem:[#allocation9 + $0x50] sm:$0xf] }
  0x48   : > { %562 = vmatpush.bf16.msra.mxu1 %v1139_v18  ;;  %v1307_v18 = vor.u32 %v1387_v16, %v1306_v15  ;;  %v1311_v27 = vor.u32 %v1386_v21, %v1308_v25  ;;  %v1369_v28 = vld [vmem:[#allocation9 + $0x54] sm:$0xf0]  ;;  %v1298_v29 = vld [vmem:[#allocation9 + $0xd0] sm:$0xf]  ;;  %v1364_v63 = vld [vmem:[#allocation9 + $0x34] sm:$0xf] }
  0x49   : > { %575 = vmatpush.bf16.msra.mxu2 %v1079_v19  ;;  %v1370_v19 = vld [vmem:[#allocation9 + $0x64] sm:$0xf]  ;;  %v1381_v62 = vld [vmem:[#allocation9 + $0xb4] sm:$0xf0]  ;;  %v1220_v0 = vld [vmem:[#allocation9 + $0x38] sm:$0xf0] }
  0x4a   : > { %588 = vmatpush.bf16.msra.mxu3 %v1143_v23  ;;  %v1247_v24 = vor.u32 %v1370_v19, %v1244_v20  ;;  %v1223_v8 = vor.u32 %v1364_v63, %v1220_v0  ;;  %v1363_v9 = vld [vmem:[#allocation9 + $0x24] sm:$0xf0]  ;;  %v1274_v10 = vld [vmem:[#allocation9 + $0xa0] sm:$0xf]  ;;  %v1362_v15 = vld [vmem:[#allocation9 + $0x24] sm:$0xf] }
  0x4b   : > { %550 = vmatpush.bf16.msra.mxu0 %v1067_v30  ;;  %v1385_v30 = vld [vmem:[#allocation9 + $0xd4] sm:$0xf0]  ;;  %v1212_v16 = vld [vmem:[#allocation9 + $0x28] sm:$0xf0]  ;;  %v1266_v25 = vld [vmem:[#allocation9 + $0x90] sm:$0xf] }
  0x4c   : > { %563 = vmatpush.bf16.msra.mxu1 %v1131_v32  ;;  %v1235_v32 = vor.u32 %v1369_v28, %v1234_v26  ;;  %s1390_s7 = sshll.u32 %s1697_s21, 4  ;;  %s326_s26 = scalar_lea.vmem [#allocation11], %s1063_s8 }
  0x4d   : > { %576 = vmatpush.bf16.msra.mxu2 %v1071_v33  ;;  %v1368_v33 = vld [vmem:[#allocation9 + $0x54] sm:$0xf]  ;;  %s930_s24 = scalar_lea.hbm %s1936_s5, %s1390_s7  ;;  %s932_s27 = sshll.u32 %s326_s26, 4  ;;  %s933_s27 = int_to_ptr.vmem [resolvable:$true] %s932_s27 }
  0x4e   : > { %589 = vmatpush.bf16.msra.mxu3 %v1135_v34  ;;  %551 = vmatmul.bf16.vlgmr.msra.gmra.mxu0 %v379_v35  ;;  %v1236_v34 = vld [vmem:[#allocation9 + $0x58] sm:$0xf0]  ;;  %s934_s28 = sshll.u32 %s930_s24, 4  ;;  %s919_s21 = scalar_lea.sflag [#allocation5], %s1856_s9  ;;  %s935_s28 = int_to_ptr.hbm [resolvable:$true] %s934_s28 }
  0x4f   : > { %564 = vmatmul.bf16.vlgmr.msra.gmra.mxu1 %v380_v36  ;;  %847 = vmatpush.bf16.msrb.mxu0 %v1251_v2  ;;  %v1239_v37 = vor.u32 %v1368_v33, %v1236_v34  ;;  %v1284_v2 = vld [vmem:[#allocation9 + $0xb8] sm:$0xf0]  ;;  %s1629_s6 = sshra.s32 %s935_s28, 4  ;;  %s1635_s25 = scalar_lea.hbm %s1936_s5, 32  ;;  %s1630_s6 = int_to_ptr.hbm [resolvable:$true] %s1629_s6 }
  0x50   : > { %577 = vmatmul.bf16.vlgmr.msra.gmra.mxu2 %v379_v35  ;;  %860 = vmatpush.bf16.msrb.mxu1 %v1315_v6  ;;  %v1384_v35 = vld [vmem:[#allocation9 + $0xd4] sm:$0xf]  ;;  %v1210_v6 = vld [vmem:[#allocation9 + $0x20] sm:$0xf]  ;;  %v1268_v33 = vld [vmem:[#allocation9 + $0x98] sm:$0xf0]  ;;  %p1636_p10 = scmp.lt.s32.totalorder %s1630_s6, %s1936_s5 }
  0x51   : > { %590 = vmatmul.bf16.vlgmr.msra.gmra.mxu3 %v380_v36  ;;  %873 = vmatpush.bf16.msrb.mxu2 %v1255_v7  ;;  %v1299_v36 = vor.u32 %v1385_v30, %v1298_v29  ;;  %v1211_v20 = vor.u32 %v1363_v9, %v1210_v6  ;;  %v1377_v29 = vld [vmem:[#allocation9 + $0x94] sm:$0xf0]  ;;  %v1360_v30 = vld [vmem:[#allocation9 + $0x14] sm:$0xf]  ;;  %s1631_s16 = scalar_lea.hbm %s1630_s6, 16 }
  0x52   : > { %886 = vmatpush.bf16.msrb.mxu3 %v1319_v13  ;;  %p1632_p1 = scmp.ne.s32.totalorder %s1630_s6, %s1631_s16  ;;  %p1637_p11 = scmp.lt.s32.totalorder %s1635_s25, %s1631_s16 }
  0x53   : > { %848 = vmatpush.bf16.msrb.mxu0 %v1243_v17  ;;  %v1378_v17 = vld [vmem:[#allocation9 + $0xa4] sm:$0xf] }
  0x54   : > { %861 = vmatpush.bf16.msrb.mxu1 %v1307_v18  ;;  %v1276_v18 = vld [vmem:[#allocation9 + $0xa8] sm:$0xf0]  ;;  %p1633_p3 = pnand %p1632_p1, %p1834_p4  ;;  %p1638_p12 = por %p1637_p11, %p1636_p10 }
  0x55   : > { %874 = vmatpush.bf16.msrb.mxu2 %v1247_v24  ;;  %v1361_v24 = vld [vmem:[#allocation9 + $0x14] sm:$0xf0]  ;;  %v1279_v28 = vor.u32 %v1378_v17, %v1276_v18 }
  0x56   : > { %887 = vmatpush.bf16.msrb.mxu3 %v1311_v27  ;;  %p1634_p9 = pneg %p1633_p3 }
  0x57   : > { %849 = vmatpush.bf16.msrb.mxu0 %v1235_v32  ;;  %v1376_v32 = vld [vmem:[#allocation9 + $0x94] sm:$0xf] }
  0x58   : > { %862 = vmatpush.bf16.msrb.mxu1 %v1299_v36  ;;  %p1639_p13 = pnand %p1638_p12, %p1634_p9 }
  0x59   : > { %875 = vmatpush.bf16.msrb.mxu2 %v1239_v37  ;;  %v1267_v37 = vor.u32 %v1377_v29, %v1266_v25 }
  0xcb   : > { %v552_v39 = vpop.f32.mrf.mxu0 }
  0xcc   : > { %v565_v40 = vpop.f32.mrf.mxu1  ;;  %v553_v41 = vadd.f32 %v552_v39, %v372_v38  ;;  %v1300_v38 = vld [vmem:[#allocation9 + $0xd8] sm:$0xf0]  ;;  %v1226_v39 = vld [vmem:[#allocation9 + $0x40] sm:$0xf] }
  0xce   : > { %v566_v44 = vadd.f32 %v565_v40, %v553_v41  ;;  %v1367_v40 = vld [vmem:[#allocation9 + $0x44] sm:$0xf0] }
  0xd3   : > { %v578_v43 = vpop.f32.mrf.mxu2  ;;  %v554_v47 = vpop.f32.mrf.mxu0 }
  0xd4   : > { %v579_v45 = vadd.f32 %v578_v43, %v373_v42  ;;  %v591_v46 = vpop.f32.mrf.mxu3  ;;  %v567_v48 = vpop.f32.mrf.mxu1  ;;  %v1303_v43 = vor.u32 %v1384_v35, %v1300_v38  ;;  %v1228_v47 = vld [vmem:[#allocation9 + $0x48] sm:$0xf0] }
  0xd5   : > { %v1382_v48 = vld [vmem:[#allocation9 + $0xc4] sm:$0xf] }
  0xd6   : > { %v592_v49 = vadd.f32 %v591_v46, %v579_v45  ;;  %v1383_v45 = vld [vmem:[#allocation9 + $0xc4] sm:$0xf0]  ;;  %v1366_v46 = vld [vmem:[#allocation9 + $0x44] sm:$0xf]  ;;  %888 = vmatpush.bf16.msrb.mxu3 %v1303_v43  ;;  %v1271_v43 = vor.u32 %v1376_v32, %v1268_v33 }
  0xd8   : > { %v595_v50 = vpack.c.bf16 %v592_v49, %v566_v44  ;;  %v1290_v44 = vld [vmem:[#allocation9 + $0xc0] sm:$0xf]  ;;  %v1292_v49 = vld [vmem:[#allocation9 + $0xc8] sm:$0xf0] }
  0xda   : > { %v1875_v51 = vunpack.c.l.bf16 %v595_v50  ;;  %v1877_v52 = vunpack.c.h.bf16 %v595_v50 }
  0xdb   : > { %v580_v53 = vpop.f32.mrf.mxu2 }
  0xdc   : > { %v598_v54 = vmul.f32 %v1875_v51, %v1875_v51  ;;  %v599_v55 = vmul.f32 %v1877_v52, %v1877_v52  ;;  %v593_v56 = vpop.f32.mrf.mxu3 }
  0xdd   : > { %v1231_v56 = vor.u32 %v1366_v46, %v1228_v47  ;;  %v1196_v46 = vld [vmem:[#allocation9 + $0x8] sm:$0xf0]  ;;  %v1374_v47 = vld [vmem:[#allocation9 + $0x84] sm:$0xf] }
  0xde   : > { %v600_v57 = vpack.c.bf16 %v599_v55, %v598_v54  ;;  %v1227_v54 = vor.u32 %v1367_v40, %v1226_v39  ;;  %v1291_v55 = vor.u32 %v1383_v45, %v1290_v44  ;;  %v1194_v39 = vld [vmem:[#allocation9] sm:$0xf]  ;;  %v1359_v40 = vld [vmem:[#allocation9 + $0x4] sm:$0xf0]  ;;  %v1358_v45 = vld [vmem:[#allocation9 + $0x4] sm:$0xf] }
  0xdf   : > { %876 = vmatpush.bf16.msrb.mxu2 %v1231_v56  ;;  %v1375_v44 = vld [vmem:[#allocation9 + $0x84] sm:$0xf0] }
  0xe0   : > { %v601_v58 = vunpack.c.l.bf16 %v600_v57  ;;  %v602_v59 = vunpack.c.h.bf16 %v600_v57  ;;  %v1218_v57 = vld [vmem:[#allocation9 + $0x30] sm:$0xf]  ;;  %850 = vmatpush.bf16.msrb.mxu0 %v1227_v54  ;;  %863 = vmatpush.bf16.msrb.mxu1 %v1291_v55  ;;  %v1199_v55 = vor.u32 %v1358_v45, %v1196_v46 }
  0xe2   : > { %v603_v60 = vmul.f32 %v601_v58, %v1875_v51  ;;  %v604_v61 = vmul.f32 %v602_v59, %v1877_v52  ;;  %v1365_v58 = vld [vmem:[#allocation9 + $0x34] sm:$0xf0]  ;;  %v1282_v59 = vld [vmem:[#allocation9 + $0xb0] sm:$0xf] }
  0xe3   : > { %v1219_v5 = vor.u32 %v1365_v58, %v1218_v57  ;;  %v1283_v7 = vor.u32 %v1381_v62, %v1282_v59  ;;  %877 = vmatpush.bf16.msrb.mxu2 %v1223_v8 }
  0xe4   : > { %v605_v1 = vpack.c.bf16 %v604_v61, %v603_v60  ;;  %v1295_v61 = vor.u32 %v1382_v48, %v1292_v49  ;;  %v1260_v48 = vld [vmem:[#allocation9 + $0x88] sm:$0xf0] }
  0xe5   : > { %851 = vmatpush.bf16.msrb.mxu0 %v1219_v5  ;;  %864 = vmatpush.bf16.msrb.mxu1 %v1283_v7  ;;  %v1263_v58 = vor.u32 %v1374_v47, %v1260_v48  ;;  %v1712_v5 = vmov 1065369472  }
  0xe6   : > { %v606_v11 = vunpack.c.l.bf16 %v605_v1  ;;  %v607_v12 = vunpack.c.h.bf16 %v605_v1  ;;  %v1380_v1 = vld [vmem:[#allocation9 + $0xb4] sm:$0xf]  ;;  %889 = vmatpush.bf16.msrb.mxu3 %v1295_v61  ;;  %v638_v6 = vunpack.c.h.bf16 %v1712_v5  ;;  %v639_v7 = vunpack.c.l.bf16 %v1712_v5 }
  0xe7   : > { %v1287_v14 = vor.u32 %v1380_v1, %v1284_v2 }
  0xe8   : > { %v608_v22 = vmul.f32 0.044677734, %v606_v11  ;;  %v609_v23 = vmul.f32 0.044677734, %v607_v12  ;;  %v1379_v11 = vld [vmem:[#allocation9 + $0xa4] sm:$0xf0] }
  0xe9   : > { %v1275_v21 = vor.u32 %v1379_v11, %v1274_v10  ;;  %852 = vmatpush.bf16.msrb.mxu0 %v1211_v20 }
  0xea   : > { %v610_v31 = vpack.c.bf16 %v609_v23, %v608_v22  ;;  %v1215_v22 = vor.u32 %v1362_v15, %v1212_v16  ;;  %v1202_v23 = vld [vmem:[#allocation9 + $0x10] sm:$0xf]  ;;  %890 = vmatpush.bf16.msrb.mxu3 %v1287_v14 }
  0xeb   : > { %v1203_v36 = vor.u32 %v1361_v24, %v1202_v23  ;;  %865 = vmatpush.bf16.msrb.mxu1 %v1275_v21 }
  0xec   : > { %v611_v41 = vunpack.c.l.bf16 %v610_v31  ;;  %v612_v42 = vunpack.c.h.bf16 %v610_v31  ;;  %v1204_v31 = vld [vmem:[#allocation9 + $0x18] sm:$0xf0]  ;;  %878 = vmatpush.bf16.msrb.mxu2 %v1215_v22 }
  0xed   : > { %v1207_v38 = vor.u32 %v1360_v30, %v1204_v31  ;;  %853 = vmatpush.bf16.msrb.mxu0 %v1203_v36 }
  0xee   : > { %v613_v50 = vadd.f32 %v611_v41, %v1875_v51  ;;  %v614_v53 = vadd.f32 %v612_v42, %v1877_v52  ;;  %v1258_v41 = vld [vmem:[#allocation9 + $0x80] sm:$0xf]  ;;  %891 = vmatpush.bf16.msrb.mxu3 %v1279_v28 }
  0xef   : > { %866 = vmatpush.bf16.msrb.mxu1 %v1267_v37  ;;  %v1259_v54 = vor.u32 %v1375_v44, %v1258_v41 }
  0xf0   : > { %v615_v60 = vpack.c.bf16 %v614_v53, %v613_v50  ;;  %v1195_v53 = vor.u32 %v1359_v40, %v1194_v39  ;;  %879 = vmatpush.bf16.msrb.mxu2 %v1207_v38 }
  0xf2   : > { %v616_v3 = vunpack.c.l.bf16 %v615_v60  ;;  %v617_v4 = vunpack.c.h.bf16 %v615_v60  ;;  %892 = vmatpush.bf16.msrb.mxu3 %v1271_v43  ;;  %854 = vmatpush.bf16.msrb.mxu0 %v1195_v53 }
  0xf3   : > { %867 = vmatpush.bf16.msrb.mxu1 %v1259_v54 }
  0xf4   : > { %v618_v12 = vmul.f32 1.59375, %v616_v3  ;;  %v619_v13 = vmul.f32 1.59375, %v617_v4  ;;  %880 = vmatpush.bf16.msrb.mxu2 %v1199_v55 }
  0xf6   : > { %v620_v19 = vpack.c.bf16 %v619_v13, %v618_v12  ;;  %893 = vmatpush.bf16.msrb.mxu3 %v1263_v58 }
  0xf8   : > { %v621_v26 = vunpack.c.l.bf16 %v620_v19  ;;  %v622_v27 = vunpack.c.h.bf16 %v620_v19  ;;  %v908_v19 = vld [vmem:[%s1935_s4] sm:$0x3] }
  0xf9   : > { %v910_v20 = vperm.slane %v908_v19, 0 }
  0xfa   : > { %v623_v34 = vsub.f32 0.0, %v621_v26  ;;  %v624_v35 = vsub.f32 0.0, %v622_v27 }
  0xfc   : > { %v625_v42 = vpack.c.bf16 %v624_v35, %v623_v34 }
  0xfe   : > { %v626_v49 = vunpack.c.l.bf16 %v625_v42  ;;  %v627_v50 = vunpack.c.h.bf16 %v625_v42 }
 0x100   : > { %v628_v56 = vmul.f32 1.442695, %v626_v49  ;;  %v630_v57 = vmul.f32 1.442695, %v627_v50 }
 0x102   : > { %1487 = vpow2.f32 %v628_v56 }
 0x103   : > { %1489 = vpow2.f32 %v630_v57 }
 0x108   : > { %v1488_v59 = vpop.eup %1487 }
 0x109   : > { %v1490_v60 = vpop.eup %1489 }
 0x10a   : > { %v632_v61 = vpack.c.bf16 %v1490_v60, %v1488_v59 }
 0x10c   : > { %v633_v62 = vunpack.c.l.bf16 %v632_v61  ;;  %v634_v63 = vunpack.c.h.bf16 %v632_v61 }
 0x10e   : > { %v635_v0 = vadd.f32 1.0, %v633_v62  ;;  %v636_v1 = vadd.f32 1.0, %v634_v63 }
 0x110   : > { %v637_v2 = vpack.c.bf16 %v636_v1, %v635_v0 }
 0x112   : > { %v640_v3 = vunpack.c.h.bf16 %v637_v2  ;;  %v641_v4 = vunpack.c.l.bf16 %v637_v2 }
 0x114   : > { %1491 = vrcp.f32 %v640_v3 }
 0x115   : > { %1493 = vrcp.f32 %v641_v4 }
 0x11a   : > { %v1492_v8 = vpop.eup %1491 }
 0x11b   : > { %v1494_v9 = vpop.eup %1493  ;;  %v643_v10 = vmul.f32 %v1492_v8, %v638_v6 }
 0x11c   : > { %v645_v11 = vmul.f32 %v1494_v9, %v639_v7 }
 0x11e   : > { %v646_v12 = vpack.c.bf16 %v643_v10, %v645_v11 }
 0x120   : > { %v647_v13 = vunpack.c.l.bf16 %v646_v12  ;;  %v648_v14 = vunpack.c.h.bf16 %v646_v12 }
 0x122   : > { %v649_v15 = vmul.f32 %v647_v13, %v1875_v51  ;;  %v650_v16 = vmul.f32 %v648_v14, %v1877_v52  ;;  %v911_v51 = vperm.slane %v908_v19, 1 }
 0x124   : > { %v651_v17 = vpack.c.bf16 %v649_v15, %v649_v15  ;;  %v652_v18 = vpack.c.bf16 %v650_v16, %v650_v16 }
 0x126   : > { %855 = vmatmul.bf16.vlgmr.msrb.gmra.mxu0 %v651_v17  ;;  %868 = vmatmul.bf16.vlgmr.msrb.gmra.mxu1 %v652_v18 }
 0x127   : > { %881 = vmatmul.bf16.vlgmr.msrb.gmra.mxu2 %v651_v17  ;;  %894 = vmatmul.bf16.vlgmr.msrb.gmra.mxu3 %v652_v18 }
 0x1a3   : > { %v856_v21 = vpop.f32.mrf.mxu0  ;;  %v869_v22 = vpop.f32.mrf.mxu1 }
 0x1a4   : > { %v870_v23 = vadd.f32 %v869_v22, %v856_v21 }
 0x1a6   : > { %v914_v24 = vadd.f32 %v910_v20, %v870_v23 }
 0x1a8   : > { %916 = vst [vmem:[%s326_s26] sm:$0xff] %v914_v24 }
 0x1aa   : > { %v882_v52 = vpop.f32.mrf.mxu2  ;;  %v895_v25 = vpop.f32.mrf.mxu3 }
 0x1ab   : > { %v896_v26 = vadd.f32 %v895_v25, %v882_v52  ;;  %v858_v27 = vpop.f32.mrf.mxu0  ;;  %v871_v28 = vpop.f32.mrf.mxu1 }
 0x1ad   : > { %v915_v29 = vadd.f32 %v911_v51, %v896_v26 }
 0x1af   : > { %917 = vst [vmem:[%s326_s26 + $0x8] sm:$0xff] %v915_v29 }
 0x1b0   : > { %1642 = shalt.err (!%p1639_p13)
}
 0x1b1   : > { %1405 = dma.vmem_to_hbm [thread:$0]  (%p1834_p4), %s933_s27, 256, %s935_s28, %s919_s21  }
 0x1b2   : > { %v884_v30 = vpop.f32.mrf.mxu2  ;;  %v897_v31 = vpop.f32.mrf.mxu3 }
 0x1b3 PF: > { %s946_s9 = sand.u32 1, %s1685_s18   ;;  %p1422_p0 = pnand %p1054_p6, %p1842_p7 }
 0x1b4   : > { %s947_s7 = scalar_lea.sflag [#allocation5], %s946_s9 }
 0x1b5   : > { %p1423_p2 = pneg %p1422_p0 }
 0x1b7   : > { %1680 = dma.done.wait (%p1423_p2), %s947_s7, 256  }
 0x1b8   : > { %1682 = vsyncadd (%p1423_p2), %s947_s7, 4294967040  ;;  %s23_s23 = sadd.s32 1, %s1705_s23   ;;  %s1944_s18 = smov %s1689_s19 }
 0x1b9   : > { %p20_p5 = scmp.ge.s32.totalorder %s23_s23, 4   ;;  %s1945_s19 = smov %s1693_s20 }
 0x1ba   : > { %s1946_s20 = smov %s1840_s11  ;;  %s1947_s21 = smov %s1701_s22 }
 0x1bb   : > { %s1948_s22 = smov %s1950_s30  ;;  %22 = sbr.rel (!%p20_p5) target bundleno = 8 (0x8), region = 108 }
 0x1c0   :  { %953 = vsyncpa [#allocation4], 1 }
 0x1c1   :  { %955 = vsyncpa [#allocation4 + $0x1], 1 }
 0x1c2   :  { %956 = vsyncpa [#allocation7], 1 }
 0x1c3   :  { %957 = vsyncpa [#allocation10], 1 }
 0x1c4   :  { %958 = vsyncpa [#allocation5], 1 }
 0x1c5   :  { %960 = vsyncpa [#allocation5 + $0x1], 1 }

</bundles_post_ra>
